<compile_context>
chip_gen: v7x
topology: tpu7x:2x2x1
jax: 0.10.0
libtpu: 0.0.40
codegen_flags: <defaults>
</compile_context>

<pallas_src>
import jax
import jax.numpy as jnp
from jax.experimental import pallas as pl
from jax.experimental.pallas import tpu as pltpu


def _round_up(x: int, m: int) -> int:
    return ((x + m - 1) // m) * m


def _gaussian_rbf_kernel(x_ref, offs_ref, coeff_ref, o_ref):
    # x_ref:     (TILE_E, 1)       flattened input distances (sublane axis)
    # offs_ref:  (1, N_RBF)        Gaussian centers (resident)
    # coeff_ref: (1, N_RBF)        -0.5 / widths^2 (precomputed, resident)
    # o_ref:     (TILE_E, N_RBF)   exp(coeff * (x - offset)^2), input dtype
    x = x_ref[...].astype(jnp.float32)          # (TE, 1)
    offs = offs_ref[...]                        # (1, N)
    coeff = coeff_ref[...]                      # (1, N)
    diff = x - offs                             # (TE, N)  VPU broadcast
    y = jnp.exp(coeff * (diff * diff))          # exp on EUP slot, f32 math
    o_ref[...] = y.astype(o_ref.dtype)


def gaussian_rbf(inputs, offsets, widths, *, tile_e=32768):
    """inputs: float array of any shape. offsets/widths: (n_rbf,).
    Returns inputs.shape + (n_rbf,) in the input dtype (PyTorch forward)."""
    orig_shape = inputs.shape
    orig_dtype = inputs.dtype
    r = inputs.reshape(-1, 1)                   # (E, 1): E on sublane axis
    E = r.shape[0]
    n_rbf = offsets.shape[0]

    # Tile sizing:
    #  * default 32768 rows (~2.5 MiB f32 output / step) to amortize the
    #    fixed per-step pipeline overhead,
    #  * but no bigger than ~half of E (rounded to 512) so v7x's 2 TCs both
    #    get grid steps, and no bigger than round_up(E, 8) (sublane multiple).
    half_e = _round_up(pl.cdiv(E, 2), 512)
    te = min(int(tile_e), max(512, half_e), max(_round_up(E, 8), 8))
    te = _round_up(te, 8)
    num_tiles = pl.cdiv(E, te)

    offs2d = offsets.astype(jnp.float32).reshape(1, n_rbf)
    coeff2d = (-0.5 / (widths.astype(jnp.float32) ** 2)).reshape(1, n_rbf)

    out = pl.pallas_call(
        _gaussian_rbf_kernel,
        out_shape=jax.ShapeDtypeStruct((E, n_rbf), orig_dtype),
        grid_spec=pltpu.PrefetchScalarGridSpec(
            num_scalar_prefetch=0,
            grid=(num_tiles,),
            in_specs=[
                pl.BlockSpec((te, 1), lambda i: (i, 0)),
                pl.BlockSpec((1, n_rbf), lambda i: (0, 0)),   # resident
                pl.BlockSpec((1, n_rbf), lambda i: (0, 0)),   # resident
            ],
            out_specs=pl.BlockSpec((te, n_rbf), lambda i: (i, 0)),
        ),
        compiler_params=pltpu.CompilerParams(
            dimension_semantics=("parallel",),
        ),
    )(r, offs2d, coeff2d)

    # TODO(synk): optional further step — fuse the downstream filter-network
    # dense (contraction over n_rbf) into this kernel so the (E, n_rbf)
    # intermediate never touches HBM; requires the consumer's weights.
    return out.reshape(*orig_shape, n_rbf)


if __name__ == "__main__":
    # Deterministic parameter setup, mirroring GaussianRBF.__init__:
    n_rbf = 20
    cutoff = 5.0
    start = 0.0
    offsets = jnp.linspace(start, cutoff, n_rbf, dtype=jnp.float32)
    widths = jnp.abs(offsets[1] - offsets[0]) * jnp.ones_like(offsets)

    # Small example inputs: pairwise-distance-like tensor (batch=2, atoms=8,
    # neighbors=8) in [0, cutoff), including one exact zero.
    key = jax.random.PRNGKey(0)
    inputs = jax.random.uniform(
        key, (2, 8, 8), dtype=jnp.float32, minval=0.0, maxval=cutoff
    )
    inputs = inputs.at[0, 0, 0].set(0.0)

    y = gaussian_rbf(inputs, offsets, widths)
    y = jax.block_until_ready(y)

    # Pure-JAX reference (same math as the PyTorch forward).
    coeff = -0.5 / (widths ** 2)
    diff = inputs[..., None] - offsets
    ref = jnp.exp(coeff * (diff ** 2))

    assert y.shape == inputs.shape + (n_rbf,)
    assert y.dtype == inputs.dtype
    assert jnp.allclose(y, ref, atol=1e-6, rtol=1e-6)
    print("KERNEL_OK")
</pallas_src>

<mosaic_0001>
module attributes {stable_mosaic.version = 11 : i64} {
  func.func @_gaussian_rbf_kernel(%arg0: i32, %arg1: memref<128x1xf32, #tpu.memory_space<vmem>>, %arg2: memref<1x20xf32, #tpu.memory_space<vmem>>, %arg3: memref<1x20xf32, #tpu.memory_space<vmem>>, %arg4: memref<128x20xf32, #tpu.memory_space<vmem>>) attributes {dimension_semantics = [#tpu.dimension_semantics<parallel>], iteration_bounds = array<i64: 1>, scalar_prefetch = 0 : i64, scratch_operands = 0 : i64, tpu.core_type = #tpu.core_type<tc>, window_params = [{transform_indices = @transform_0, window_bounds = array<i64: 128, 1>}, {pipeline_mode = #tpu.pipeline_mode<synchronous>, transform_indices = @transform_1, window_bounds = array<i64: 1, 20>}, {pipeline_mode = #tpu.pipeline_mode<synchronous>, transform_indices = @transform_2, window_bounds = array<i64: 1, 20>}, {transform_indices = @transform_3, window_bounds = array<i64: 128, 20>}]} {
    %c0 = arith.constant 0 : index
    %c0_0 = arith.constant 0 : index
    %0 = vector.load %arg1[%c0, %c0_0] : memref<128x1xf32, #tpu.memory_space<vmem>>, vector<128x1xf32>
    %c0_1 = arith.constant 0 : index
    %c0_2 = arith.constant 0 : index
    %1 = vector.load %arg2[%c0_1, %c0_2] : memref<1x20xf32, #tpu.memory_space<vmem>>, vector<1x20xf32>
    %c0_3 = arith.constant 0 : index
    %c0_4 = arith.constant 0 : index
    %2 = vector.load %arg3[%c0_3, %c0_4] : memref<1x20xf32, #tpu.memory_space<vmem>>, vector<1x20xf32>
    %3 = vector.broadcast %0 : vector<128x1xf32> to vector<128x20xf32>
    %4 = vector.broadcast %1 : vector<1x20xf32> to vector<128x20xf32>
    %5 = arith.subf %3, %4 : vector<128x20xf32>
    %6 = arith.mulf %5, %5 : vector<128x20xf32>
    %7 = vector.broadcast %2 : vector<1x20xf32> to vector<128x20xf32>
    %8 = arith.mulf %7, %6 : vector<128x20xf32>
    %9 = math.exp %8 : vector<128x20xf32>
    %c0_5 = arith.constant 0 : index
    %c0_6 = arith.constant 0 : index
    %10 = vector.load %arg4[%c0_5, %c0_6] : memref<128x20xf32, #tpu.memory_space<vmem>>, vector<128x20xf32>
    tpu.vector_store %arg4[%c0_5, %c0_6], %9 {strides = array<i32>} : memref<128x20xf32, #tpu.memory_space<vmem>>, vector<128x20xf32>,
    return
  }
  func.func @transform_0(%arg0: i32) -> (i32, i32) {
    %c0_i32 = arith.constant 0 : i32
    %c0_i32_0 = arith.constant 0 : i32
    return %arg0, %c0_i32 : i32, i32
  }
  func.func @transform_1(%arg0: i32) -> (i32, i32) {
    %c0_i32 = arith.constant 0 : i32
    %c0_i32_0 = arith.constant 0 : i32
    %c0_i32_1 = arith.constant 0 : i32
    return %c0_i32, %c0_i32_0 : i32, i32
  }
  func.func @transform_2(%arg0: i32) -> (i32, i32) {
    %c0_i32 = arith.constant 0 : i32
    %c0_i32_0 = arith.constant 0 : i32
    %c0_i32_1 = arith.constant 0 : i32
    return %c0_i32, %c0_i32_0 : i32, i32
  }
  func.func @transform_3(%arg0: i32) -> (i32, i32) {
    %c0_i32 = arith.constant 0 : i32
    %c0_i32_0 = arith.constant 0 : i32
    return %arg0, %c0_i32 : i32, i32
  }
}

</mosaic_0001>

<bundles_post_ra>
// kernel: tpu_custom_call.1
= control target key start
LH: loop header
LB: loop body
LE: loop exit
PB: predicated region body
PF: predicated region fallthrough
CT: control target
= control target key end

     0   :  { %v262_v0 = vmov 0   ;;  %vm204_vm0 = vcmask 162816   ;;  %s437_s0 = inlined_call_operand.vmem [shape: f32[128,1], index: 0, kind: input, shape index: {}]   ;;  %s438_s1 = inlined_call_operand.vmem [shape: f32[1,20], index: 1, kind: input, shape index: {}]   ;;  %s439_s2 = inlined_call_operand.vmem [shape: f32[1,20], index: 2, kind: input, shape index: {}]   ;;  %s440_s3 = inlined_call_operand.vmem [shape: f32[128,20], index: 3, kind: output, shape index: {}]  }
   0x1   :  { %229 = vset.pattern.permute.xlu1 %v262_v0  ;;  %228 = vset.pattern.permute.xlu0 %v262_v0  ;;  %v16_v1 = vld [vmem:[%s437_s0 + $0x10] sm:$0xff]  ;;  %v14_v2 = vld [vmem:[%s437_s0] sm:$0xff]  ;;  %v17_v3 = vld [vmem:[%s437_s0 + $0x18] sm:$0xff] }
   0x2   :  { %44 = vperm.xlu1 %229, %v16_v1   ;;  %34 = vperm.xlu0 %228, %v14_v2   ;;  %v15_v4 = vld [vmem:[%s437_s0 + $0x8] sm:$0xff]  ;;  %v18_v6 = vld [vmem:[%s437_s0 + $0x20] sm:$0xff]  ;;  %v21_v7 = vld [vmem:[%s437_s0 + $0x38] sm:$0xff] }
   0x3   :  { %v19_v5 = vld [vmem:[%s437_s0 + $0x28] sm:$0xff]  ;;  %v20_v8 = vld [vmem:[%s437_s0 + $0x30] sm:$0xff]  ;;  %v22_v10 = vld [vmem:[%s437_s0 + $0x40] sm:$0xff] }
   0x4   :  { %v23_v9 = vld [vmem:[%s437_s0 + $0x48] sm:$0xff]  ;;  %v25_v11 = vld [vmem:[%s437_s0 + $0x58] sm:$0xff]  ;;  %v24_v12 = vld [vmem:[%s437_s0 + $0x50] sm:$0xff] }
   0x5   :  { %v27_v13 = vld [vmem:[%s437_s0 + $0x68] sm:$0xff]  ;;  %v26_v14 = vld [vmem:[%s437_s0 + $0x60] sm:$0xff]  ;;  %v29_v15 = vld [vmem:[%s437_s0 + $0x78] sm:$0xff] }
   0x6   :  { %49 = vperm.xlu1 %229, %v17_v3   ;;  %39 = vperm.xlu0 %228, %v15_v4   ;;  %v28_v16 = vld [vmem:[%s437_s0 + $0x70] sm:$0xff]  ;;  %v334_v17 = vld [vmem:[%s438_s1] ss:$0 sm:$0xff] }
   0x7   :  { %v341_v22 = vld [vmem:[%s439_s2] ss:$0 sm:$0xff] }
   0xa   :  { %59 = vperm.xlu1 %229, %v19_v5   ;;  %54 = vperm.xlu0 %228, %v18_v6  }
   0xe   :  { %69 = vperm.xlu1 %229, %v21_v7   ;;  %64 = vperm.xlu0 %228, %v20_v8  }
  0x12   :  { %79 = vperm.xlu1 %229, %v23_v9   ;;  %74 = vperm.xlu0 %228, %v22_v10  }
  0x16   :  { %89 = vperm.xlu1 %229, %v25_v11   ;;  %84 = vperm.xlu0 %228, %v24_v12  }
  0x1a   :  { %99 = vperm.xlu1 %229, %v27_v13   ;;  %94 = vperm.xlu0 %228, %v26_v14  }
  0x1e   :  { %109 = vperm.xlu1 %229, %v29_v15   ;;  %104 = vperm.xlu0 %228, %v28_v16  }
  0x81   :  { %v45_v18 = vpop.permute.xlu1 %44  ;;  %v35_v19 = vpop.permute.xlu0 %34 }
  0x82   :  { %v120_v20 = vsub.f32 %v45_v18, %v334_v17  ;;  %v118_v21 = vsub.f32 %v35_v19, %v334_v17 }
  0x84   :  { %v136_v23 = vmul.f32 %v120_v20, %v120_v20  ;;  %v134_v24 = vmul.f32 %v118_v21, %v118_v21 }
  0x85   :  { %v50_v25 = vpop.permute.xlu1 %49  ;;  %v40_v26 = vpop.permute.xlu0 %39 }
  0x86   :  { %v158_v27 = vmul.f32 %v341_v22, %v136_v23  ;;  %v156_v28 = vmul.f32 %v341_v22, %v134_v24  ;;  %v121_v29 = vsub.f32 %v50_v25, %v334_v17  ;;  %v119_v30 = vsub.f32 %v40_v26, %v334_v17 }
  0x88   :  { %v176_v31 = vmul.f32 1.442695, %v158_v27  ;;  %v172_v32 = vmul.f32 1.442695, %v156_v28  ;;  %v137_v33 = vmul.f32 %v121_v29, %v121_v29  ;;  %v135_v34 = vmul.f32 %v119_v30, %v119_v30 }
  0x89   :  { %v60_v35 = vpop.permute.xlu1 %59  ;;  %v55_v36 = vpop.permute.xlu0 %54 }
  0x8a   :  { %230 = vpow2.f32 %v176_v31  ;;  %v159_v37 = vmul.f32 %v341_v22, %v137_v33  ;;  %v157_v38 = vmul.f32 %v341_v22, %v135_v34  ;;  %v123_v39 = vsub.f32 %v60_v35, %v334_v17 }
  0x8b   :  { %232 = vpow2.f32 %v172_v32  ;;  %v122_v40 = vsub.f32 %v55_v36, %v334_v17 }
  0x8c   :  { %v178_v41 = vmul.f32 1.442695, %v159_v37  ;;  %v174_v42 = vmul.f32 1.442695, %v157_v38  ;;  %v139_v43 = vmul.f32 %v123_v39, %v123_v39 }
  0x8d   :  { %v138_v44 = vmul.f32 %v122_v40, %v122_v40  ;;  %v70_v45 = vpop.permute.xlu1 %69  ;;  %v65_v46 = vpop.permute.xlu0 %64 }
  0x8e   :  { %234 = vpow2.f32 %v178_v41  ;;  %v161_v47 = vmul.f32 %v341_v22, %v139_v43  ;;  %v125_v48 = vsub.f32 %v70_v45, %v334_v17  ;;  %v124_v49 = vsub.f32 %v65_v46, %v334_v17 }
  0x8f   :  { %236 = vpow2.f32 %v174_v42  ;;  %v160_v50 = vmul.f32 %v341_v22, %v138_v44 }
  0x90   :  { %v182_v51 = vmul.f32 1.442695, %v161_v47  ;;  %v141_v52 = vmul.f32 %v125_v48, %v125_v48  ;;  %v140_v53 = vmul.f32 %v124_v49, %v124_v49 }
  0x91   :  { %v180_v54 = vmul.f32 1.442695, %v160_v50  ;;  %v80_v55 = vpop.permute.xlu1 %79  ;;  %v75_v56 = vpop.permute.xlu0 %74 }
  0x92   :  { %238 = vpow2.f32 %v182_v51  ;;  %v163_v57 = vmul.f32 %v341_v22, %v141_v52  ;;  %v162_v58 = vmul.f32 %v341_v22, %v140_v53  ;;  %v127_v59 = vsub.f32 %v80_v55, %v334_v17 }
  0x93   :  { %240 = vpow2.f32 %v180_v54  ;;  %v126_v60 = vsub.f32 %v75_v56, %v334_v17 }
  0x94   :  { %v231_v61 = vpop.eup %230  ;;  %v186_v62 = vmul.f32 1.442695, %v163_v57  ;;  %v184_v63 = vmul.f32 1.442695, %v162_v58  ;;  %v143_v0 = vmul.f32 %v127_v59, %v127_v59 }
  0x95   :  { %v233_v1 = vpop.eup %232  ;;  %207 = vst.msk [vmem:[%s440_s3 + $0x10] sm:$0xff] %vm204_vm0, %v231_v61  ;;  %v142_v2 = vmul.f32 %v126_v60, %v126_v60  ;;  %v90_v3 = vpop.permute.xlu1 %89 }
  0x96   :  { %v85_v4 = vpop.permute.xlu0 %84  ;;  %205 = vst.msk [vmem:[%s440_s3] sm:$0xff] %vm204_vm0, %v233_v1  ;;  %242 = vpow2.f32 %v186_v62  ;;  %v165_v5 = vmul.f32 %v341_v22, %v143_v0  ;;  %v129_v6 = vsub.f32 %v90_v3, %v334_v17 }
  0x97   :  { %v128_v7 = vsub.f32 %v85_v4, %v334_v17  ;;  %244 = vpow2.f32 %v184_v63  ;;  %v164_v8 = vmul.f32 %v341_v22, %v142_v2 }
  0x98   :  { %v235_v9 = vpop.eup %234  ;;  %v190_v10 = vmul.f32 1.442695, %v165_v5  ;;  %v145_v11 = vmul.f32 %v129_v6, %v129_v6 }
  0x99   :  { %v144_v12 = vmul.f32 %v128_v7, %v128_v7  ;;  %v237_v13 = vpop.eup %236  ;;  %208 = vst.msk [vmem:[%s440_s3 + $0x18] sm:$0xff] %vm204_vm0, %v235_v9  ;;  %v188_v14 = vmul.f32 1.442695, %v164_v8  ;;  %v100_v15 = vpop.permute.xlu1 %99 }
  0x9a   :  { %v95_v16 = vpop.permute.xlu0 %94  ;;  %206 = vst.msk [vmem:[%s440_s3 + $0x8] sm:$0xff] %vm204_vm0, %v237_v13  ;;  %246 = vpow2.f32 %v190_v10  ;;  %v167_v18 = vmul.f32 %v341_v22, %v145_v11  ;;  %v131_v20 = vsub.f32 %v100_v15, %v334_v17 }
  0x9b   :  { %v166_v19 = vmul.f32 %v341_v22, %v144_v12  ;;  %248 = vpow2.f32 %v188_v14  ;;  %v130_v21 = vsub.f32 %v95_v16, %v334_v17 }
  0x9c   :  { %v239_v23 = vpop.eup %238  ;;  %v194_v24 = vmul.f32 1.442695, %v167_v18  ;;  %v147_v26 = vmul.f32 %v131_v20, %v131_v20 }
  0x9d   :  { %v192_v25 = vmul.f32 1.442695, %v166_v19  ;;  %v241_v27 = vpop.eup %240  ;;  %210 = vst.msk [vmem:[%s440_s3 + $0x28] sm:$0xff] %vm204_vm0, %v239_v23  ;;  %v146_v28 = vmul.f32 %v130_v21, %v130_v21  ;;  %v110_v29 = vpop.permute.xlu1 %109 }
  0x9e   :  { %v105_v30 = vpop.permute.xlu0 %104  ;;  %209 = vst.msk [vmem:[%s440_s3 + $0x20] sm:$0xff] %vm204_vm0, %v241_v27  ;;  %250 = vpow2.f32 %v194_v24  ;;  %v169_v31 = vmul.f32 %v341_v22, %v147_v26  ;;  %v133_v32 = vsub.f32 %v110_v29, %v334_v17 }
  0x9f   :  { %v132_v33 = vsub.f32 %v105_v30, %v334_v17  ;;  %252 = vpow2.f32 %v192_v25  ;;  %v168_v34 = vmul.f32 %v341_v22, %v146_v28 }
  0xa0   :  { %v243_v35 = vpop.eup %242  ;;  %v198_v36 = vmul.f32 1.442695, %v169_v31  ;;  %v149_v37 = vmul.f32 %v133_v32, %v133_v32 }
  0xa1   :  { %v148_v38 = vmul.f32 %v132_v33, %v132_v33  ;;  %v245_v39 = vpop.eup %244  ;;  %212 = vst.msk [vmem:[%s440_s3 + $0x38] sm:$0xff] %vm204_vm0, %v243_v35  ;;  %v196_v40 = vmul.f32 1.442695, %v168_v34 }
  0xa2   :  { %211 = vst.msk [vmem:[%s440_s3 + $0x30] sm:$0xff] %vm204_vm0, %v245_v39  ;;  %254 = vpow2.f32 %v198_v36  ;;  %v171_v17 = vmul.f32 %v341_v22, %v149_v37 }
  0xa3   :  { %v170_v41 = vmul.f32 %v341_v22, %v148_v38  ;;  %256 = vpow2.f32 %v196_v40 }
  0xa4   :  { %v247_v42 = vpop.eup %246  ;;  %v202_v43 = vmul.f32 1.442695, %v171_v17 }
  0xa5   :  { %v200_v44 = vmul.f32 1.442695, %v170_v41  ;;  %v249_v45 = vpop.eup %248  ;;  %214 = vst.msk [vmem:[%s440_s3 + $0x48] sm:$0xff] %vm204_vm0, %v247_v42 }
  0xa6   :  { %213 = vst.msk [vmem:[%s440_s3 + $0x40] sm:$0xff] %vm204_vm0, %v249_v45  ;;  %258 = vpow2.f32 %v202_v43 }
  0xa7   :  { %260 = vpow2.f32 %v200_v44 }
  0xa8   :  { %v251_v46 = vpop.eup %250 }
  0xa9   :  { %v253_v47 = vpop.eup %252  ;;  %216 = vst.msk [vmem:[%s440_s3 + $0x58] sm:$0xff] %vm204_vm0, %v251_v46 }
  0xaa   :  { %215 = vst.msk [vmem:[%s440_s3 + $0x50] sm:$0xff] %vm204_vm0, %v253_v47 }
  0xac   :  { %v255_v22 = vpop.eup %254 }
  0xad   :  { %v257_v48 = vpop.eup %256  ;;  %218 = vst.msk [vmem:[%s440_s3 + $0x68] sm:$0xff] %vm204_vm0, %v255_v22 }
  0xae   :  { %217 = vst.msk [vmem:[%s440_s3 + $0x60] sm:$0xff] %vm204_vm0, %v257_v48 }
  0xb0   :  { %v259_v49 = vpop.eup %258 }
  0xb1   :  { %v261_v50 = vpop.eup %260  ;;  %220 = vst.msk [vmem:[%s440_s3 + $0x78] sm:$0xff] %vm204_vm0, %v259_v49 }
  0xb2   :  { %219 = vst.msk [vmem:[%s440_s3 + $0x70] sm:$0xff] %vm204_vm0, %v261_v50 }

</bundles_post_ra>
